<compile_context>
chip_gen: v7x
topology: tpu7x:2x2x1
jax: 0.10.0
libtpu: 0.0.40
codegen_flags: <defaults>
</compile_context>

<pallas_src>
import functools

import jax
import jax.numpy as jnp
from jax.experimental import pallas as pl
from jax.experimental.pallas import tpu as pltpu


# ----------------------------------------------------------------------------
# Fused Pallas kernel: Linear -> ReLU -> Linear -> LayerNorm -> residual add
# ----------------------------------------------------------------------------
def _lblock_kernel(x_ref, w1_ref, w2_ref, aux_ref, o_ref, *, eps):
    x = x_ref[...]                                   # (tm, H), native dtype

    b1 = aux_ref[0:1, :]
    b2 = aux_ref[1:2, :]
    gamma = aux_ref[2:3, :]
    beta = aux_ref[3:4, :]

    # Linear1 + ReLU (default precision -> single-pass MXU, f32 accumulation).
    h = jnp.dot(x, w1_ref[...], preferred_element_type=jnp.float32)
    h = jnp.maximum(h + b1, 0.0)

    # Linear2 (feed the MXU operands in the weights' native dtype).
    y = jnp.dot(h.astype(w2_ref.dtype), w2_ref[...],
                preferred_element_type=jnp.float32)
    y = y + b2

    # LayerNorm over the hidden (lane) dim -- full H lives inside this tile.
    mean = jnp.mean(y, axis=-1, keepdims=True)
    yc = y - mean
    var = jnp.mean(yc * yc, axis=-1, keepdims=True)
    inv = jax.lax.rsqrt(var + eps)
    ln = yc * inv * gamma + beta

    # Residual add; single lane-dense store of the whole tile.
    o_ref[...] = (ln + x.astype(jnp.float32)).astype(o_ref.dtype)


# ----------------------------------------------------------------------------
# Row-tile selection (VMEM-budgeted, MXU-friendly, megacore-friendly)
# ----------------------------------------------------------------------------
def _round_up(v, m):
    return ((v + m - 1) // m) * m


def _choose_row_tile(M, H, x_bytes, w_bytes, budget_bytes=40 * (1 << 20)):
    """Pick (row_tile, padded_rows)."""
    Mp = _round_up(M, 8)
    # Per-row VMEM: double-buffered x + out streams, plus f32 intermediates
    # (h / y / centered y) the compiler materializes.
    per_row = (4 * x_bytes + 8 * 4) * H
    weight_bytes = 2 * H * H * w_bytes + 8 * H * w_bytes
    avail = max(budget_bytes - weight_bytes, 8 * per_row)
    cap = max(8, (avail // per_row) // 8 * 8)
    cap = min(cap, 512)                       # keep tiles modest for pipelining
    if Mp >= 512:                             # leave >=2 grid steps (v7x 2 TCs)
        cap = min(cap, max(256, (_round_up(Mp, 512) // 2 // 256) * 256))
    if Mp <= cap:
        return Mp, Mp                         # single block, no padding
    tm = (cap // 8) * 8
    while tm >= 128:                          # padding-free tile if possible
        if Mp % tm == 0:
            return tm, Mp
        tm -= 8
    tm = min(cap, 256)
    return tm, _round_up(Mp, tm)


# ----------------------------------------------------------------------------
# Wrapper
# ----------------------------------------------------------------------------
def lblock_forward(params, x, *, eps=1e-5):
    """x: (..., H) -> (..., H). One pallas_call for the whole residual block."""
    W1, W2 = params["W1"], params["W2"]
    H = x.shape[-1]
    aux = jnp.stack([params["b1"], params["b2"],
                     params["gamma"], params["beta"]], axis=0)   # (4, H)

    orig_shape = x.shape
    x2 = x.reshape(-1, H)
    M = x2.shape[0]

    x_bytes = x2.dtype.itemsize
    w_bytes = W1.dtype.itemsize
    tm, Mp = _choose_row_tile(M, H, x_bytes, w_bytes)
    if Mp != M:
        # TODO(synk): only fires for awkward (non divisor-friendly) row counts;
        # rely on ragged last-tile masking instead of a pad copy if that case
        # ever matters at scale.
        x2 = jnp.pad(x2, ((0, Mp - M), (0, 0)))

    grid = (Mp // tm,)

    # Scoped-VMEM sizing (v5e default is only 16 MiB; v6e/v7x default 32 MiB).
    est = (tm * (4 * x_bytes + 8 * 4) * H          # streamed x/out + f32 temps
           + 2 * H * H * w_bytes                   # W1, W2 (single-buffered)
           + 8 * H * w_bytes                       # packed aux (padded rows)
           + (2 << 20))                            # slack
    vmem_limit = int(min(max(est, 20 << 20), 50 << 20))

    cost = pl.CostEstimate(
        flops=4 * Mp * H * H,                      # two M x H x H matmuls
        transcendentals=Mp,                        # one rsqrt per row
        bytes_accessed=(2 * Mp * H * x_bytes       # x in + out
                        + 2 * H * H * w_bytes      # W1, W2
                        + 4 * H * w_bytes),        # packed params
    )

    resident = pl.Buffered(1)   # constant index_map -> no double buffering

    out = pl.pallas_call(
        functools.partial(_lblock_kernel, eps=eps),
        out_shape=jax.ShapeDtypeStruct((Mp, H), x.dtype),
        grid_spec=pltpu.PrefetchScalarGridSpec(
            num_scalar_prefetch=0,
            grid=grid,
            in_specs=[
                pl.BlockSpec((tm, H), lambda i: (i, 0)),                          # x rows (streamed)
                pl.BlockSpec((H, H), lambda i: (0, 0), pipeline_mode=resident),   # W1 (VMEM resident)
                pl.BlockSpec((H, H), lambda i: (0, 0), pipeline_mode=resident),   # W2 (VMEM resident)
                pl.BlockSpec((4, H), lambda i: (0, 0), pipeline_mode=resident),   # b1/b2/gamma/beta
            ],
            out_specs=pl.BlockSpec((tm, H), lambda i: (i, 0)),
        ),
        compiler_params=pltpu.CompilerParams(
            dimension_semantics=("parallel",),
            vmem_limit_bytes=vmem_limit),
        cost_estimate=cost,
    )(x2, W1, W2, aux)

    if Mp != M:
        out = out[:M]
    return out.reshape(orig_shape)


# ----------------------------------------------------------------------------
# Parameter init (PyTorch-like defaults) + pure-JAX reference
# ----------------------------------------------------------------------------
def init_lblock(key, hidden_size):
    k1, k2, k3, k4 = jax.random.split(key, 4)
    s = 1.0 / jnp.sqrt(jnp.float32(hidden_size))
    return {
        "W1": jax.random.uniform(k1, (hidden_size, hidden_size), jnp.float32, -s, s),
        "b1": jax.random.uniform(k2, (hidden_size,), jnp.float32, -s, s),
        "W2": jax.random.uniform(k3, (hidden_size, hidden_size), jnp.float32, -s, s),
        "b2": jax.random.uniform(k4, (hidden_size,), jnp.float32, -s, s),
        "gamma": jnp.ones((hidden_size,), jnp.float32),
        "beta": jnp.zeros((hidden_size,), jnp.float32),
    }


def lblock_reference(params, x, eps=1e-5):
    h = jnp.maximum(jnp.dot(x, params["W1"]) + params["b1"], 0.0)
    y = jnp.dot(h, params["W2"]) + params["b2"]
    mean = jnp.mean(y, axis=-1, keepdims=True)
    var = jnp.mean((y - mean) ** 2, axis=-1, keepdims=True)
    ln = (y - mean) * jax.lax.rsqrt(var + eps) * params["gamma"] + params["beta"]
    return ln + x


# ----------------------------------------------------------------------------
if __name__ == "__main__":
    key = jax.random.PRNGKey(0)
    kparam, kin = jax.random.split(key)

    B, S, H = 2, 8, 128          # small shapes; H multiple of 128 -> lane-dense
    params = init_lblock(kparam, H)
    x = jax.random.normal(kin, (B, S, H), jnp.float32)

    fwd = jax.jit(functools.partial(lblock_forward, params))
    out = fwd(x)
    jax.block_until_ready(out)

    assert out.shape == (B, S, H) and out.dtype == jnp.float32
    ref = lblock_reference(params, x)
    err = float(jnp.max(jnp.abs(out - ref)))
    # Both kernel and reference use DEFAULT matmul precision (single-pass MXU),
    # so the tolerance only needs to absorb reduction-order differences.
    assert err < 2e-2, f"max abs error {err}"
    print("KERNEL_OK")
</pallas_src>

<mosaic_0001>
module attributes {stable_mosaic.version = 11 : i64} {
  func.func @_lblock_kernel(%arg0: i32, %arg1: memref<16x128xf32, #tpu.memory_space<vmem>>, %arg2: memref<128x128xf32, #tpu.memory_space<vmem>>, %arg3: memref<128x128xf32, #tpu.memory_space<vmem>>, %arg4: memref<4x128xf32, #tpu.memory_space<vmem>>, %arg5: memref<16x128xf32, #tpu.memory_space<vmem>>) attributes {dimension_semantics = [#tpu.dimension_semantics<parallel>], iteration_bounds = array<i64: 1>, scalar_prefetch = 0 : i64, scratch_operands = 0 : i64, tpu.core_type = #tpu.core_type<tc>, window_params = [{transform_indices = @transform_0, window_bounds = array<i64: 16, 128>}, {pipeline_mode = #tpu.pipeline_mode<synchronous>, transform_indices = @transform_1, window_bounds = array<i64: 128, 128>}, {pipeline_mode = #tpu.pipeline_mode<synchronous>, transform_indices = @transform_2, window_bounds = array<i64: 128, 128>}, {pipeline_mode = #tpu.pipeline_mode<synchronous>, transform_indices = @transform_3, window_bounds = array<i64: 4, 128>}, {transform_indices = @transform_4, window_bounds = array<i64: 16, 128>}]} {
    %c0 = arith.constant 0 : index
    %c0_0 = arith.constant 0 : index
    %0 = vector.load %arg1[%c0, %c0_0] : memref<16x128xf32, #tpu.memory_space<vmem>>, vector<16x128xf32>
    %c0_1 = arith.constant 0 : index
    %c0_2 = arith.constant 0 : index
    %1 = vector.load %arg4[%c0_1, %c0_2] : memref<4x128xf32, #tpu.memory_space<vmem>>, vector<1x128xf32>
    %c1 = arith.constant 1 : index
    %c0_3 = arith.constant 0 : index
    %2 = vector.load %arg4[%c1, %c0_3] : memref<4x128xf32, #tpu.memory_space<vmem>>, vector<1x128xf32>
    %c2 = arith.constant 2 : index
    %c0_4 = arith.constant 0 : index
    %3 = vector.load %arg4[%c2, %c0_4] : memref<4x128xf32, #tpu.memory_space<vmem>>, vector<1x128xf32>
    %c3 = arith.constant 3 : index
    %c0_5 = arith.constant 0 : index
    %4 = vector.load %arg4[%c3, %c0_5] : memref<4x128xf32, #tpu.memory_space<vmem>>, vector<1x128xf32>
    %c0_6 = arith.constant 0 : index
    %c0_7 = arith.constant 0 : index
    %5 = vector.load %arg2[%c0_6, %c0_7] : memref<128x128xf32, #tpu.memory_space<vmem>>, vector<128x128xf32>
    %cst = arith.constant dense<0.000000e+00> : vector<16x128xf32>
    %6 = tpu.matmul %0, %5, %cst {dimension_numbers = #tpu.dot_dimension_numbers<[1], [0], [0], [1], [0, 0, 1, 1], [], []>} : vector<16x128xf32>, vector<128x128xf32>, vector<16x128xf32> -> vector<16x128xf32>
    %7 = vector.broadcast %1 : vector<1x128xf32> to vector<16x128xf32>
    %8 = arith.addf %6, %7 : vector<16x128xf32>
    %cst_8 = arith.constant 0.000000e+00 : f32
    %9 = vector.broadcast %cst_8 : f32 to vector<16x128xf32>
    %10 = arith.maximumf %8, %9 : vector<16x128xf32>
    %c0_9 = arith.constant 0 : index
    %c0_10 = arith.constant 0 : index
    %11 = vector.load %arg3[%c0_9, %c0_10] : memref<128x128xf32, #tpu.memory_space<vmem>>, vector<128x128xf32>
    %cst_11 = arith.constant dense<0.000000e+00> : vector<16x128xf32>
    %12 = tpu.matmul %10, %11, %cst_11 {dimension_numbers = #tpu.dot_dimension_numbers<[1], [0], [0], [1], [0, 0, 1, 1], [], []>} : vector<16x128xf32>, vector<128x128xf32>, vector<16x128xf32> -> vector<16x128xf32>
    %13 = vector.broadcast %2 : vector<1x128xf32> to vector<16x128xf32>
    %14 = arith.addf %12, %13 : vector<16x128xf32>
    %cst_12 = arith.constant dense<0.000000e+00> : vector<16xf32>
    %15 = vector.multi_reduction <add>, %14, %cst_12 [1] : vector<16x128xf32> to vector<16xf32>
    %16 = vector.shape_cast %15 : vector<16xf32> to vector<16x1xf32>
    %cst_13 = arith.constant 1.280000e+02 : f32
    %17 = vector.broadcast %cst_13 : f32 to vector<16x1xf32>
    %18 = arith.divf %16, %17 : vector<16x1xf32>
    %19 = vector.broadcast %18 : vector<16x1xf32> to vector<16x128xf32>
    %20 = arith.subf %14, %19 : vector<16x128xf32>
    %21 = arith.mulf %20, %20 : vector<16x128xf32>
    %cst_14 = arith.constant dense<0.000000e+00> : vector<16xf32>
    %22 = vector.multi_reduction <add>, %21, %cst_14 [1] : vector<16x128xf32> to vector<16xf32>
    %23 = vector.shape_cast %22 : vector<16xf32> to vector<16x1xf32>
    %cst_15 = arith.constant 1.280000e+02 : f32
    %24 = vector.broadcast %cst_15 : f32 to vector<16x1xf32>
    %25 = arith.divf %23, %24 : vector<16x1xf32>
    %cst_16 = arith.constant 9.99999974E-6 : f32
    %26 = vector.broadcast %cst_16 : f32 to vector<16x1xf32>
    %27 = arith.addf %25, %26 : vector<16x1xf32>
    %28 = math.rsqrt %27 : vector<16x1xf32>
    %29 = vector.broadcast %28 : vector<16x1xf32> to vector<16x128xf32>
    %30 = arith.mulf %20, %29 : vector<16x128xf32>
    %31 = vector.broadcast %3 : vector<1x128xf32> to vector<16x128xf32>
    %32 = arith.mulf %30, %31 : vector<16x128xf32>
    %33 = vector.broadcast %4 : vector<1x128xf32> to vector<16x128xf32>
    %34 = arith.addf %32, %33 : vector<16x128xf32>
    %35 = arith.addf %34, %0 : vector<16x128xf32>
    %c0_17 = arith.constant 0 : index
    %c0_18 = arith.constant 0 : index
    %36 = vector.load %arg5[%c0_17, %c0_18] : memref<16x128xf32, #tpu.memory_space<vmem>>, vector<16x128xf32>
    tpu.vector_store %arg5[%c0_17, %c0_18], %35 {strides = array<i32>} : memref<16x128xf32, #tpu.memory_space<vmem>>, vector<16x128xf32>,
    return
  }
  func.func @transform_0(%arg0: i32) -> (i32, i32) {
    %c0_i32 = arith.constant 0 : i32
    %c0_i32_0 = arith.constant 0 : i32
    return %arg0, %c0_i32 : i32, i32
  }
  func.func @transform_1(%arg0: i32) -> (i32, i32) {
    %c0_i32 = arith.constant 0 : i32
    %c0_i32_0 = arith.constant 0 : i32
    %c0_i32_1 = arith.constant 0 : i32
    return %c0_i32, %c0_i32_0 : i32, i32
  }
  func.func @transform_2(%arg0: i32) -> (i32, i32) {
    %c0_i32 = arith.constant 0 : i32
    %c0_i32_0 = arith.constant 0 : i32
    %c0_i32_1 = arith.constant 0 : i32
    return %c0_i32, %c0_i32_0 : i32, i32
  }
  func.func @transform_3(%arg0: i32) -> (i32, i32) {
    %c0_i32 = arith.constant 0 : i32
    %c0_i32_0 = arith.constant 0 : i32
    %c0_i32_1 = arith.constant 0 : i32
    return %c0_i32, %c0_i32_0 : i32, i32
  }
  func.func @transform_4(%arg0: i32) -> (i32, i32) {
    %c0_i32 = arith.constant 0 : i32
    %c0_i32_0 = arith.constant 0 : i32
    return %arg0, %c0_i32 : i32, i32
  }
}

</mosaic_0001>

<bundles_post_ra>
// kernel: lblock_forward.1
= control target key start
LH: loop header
LB: loop body
LE: loop exit
PB: predicated region body
PF: predicated region fallthrough
CT: control target
= control target key end

     0   :  { %9 = vsyncpa [#allocation3], 0  ;;  %s706_s0 = inlined_call_operand.hbm [shape: f32[16,128], index: 0, kind: input, shape index: {}]   ;;  %s707_s1 = inlined_call_operand.hbm [shape: f32[128,128], index: 1, kind: input, shape index: {}]   ;;  %s708_s2 = inlined_call_operand.hbm [shape: f32[128,128], index: 2, kind: input, shape index: {}]   ;;  %s709_s3 = inlined_call_operand.vmem [shape: f32[4,128], index: 3, kind: input, shape index: {}]   ;;  %s710_s4 = inlined_call_operand.hbm [shape: f32[16,128], index: 4, kind: output, shape index: {}]  }
   0x1   :  { %10 = vsyncpa [#allocation6], 0 }
   0x2   :  { %11 = vsyncpa [#allocation4], 0  ;;  %s592_s15 = smov [#allocation5]   ;;  %s593_s17 = smov [#allocation2]  }
   0x3   :  { %s29_s16 = sshll.u32 %s592_s15, 4  ;;  %s17_s18 = sshll.u32 %s593_s17, 4  ;;  %s30_s16 = int_to_ptr.vmem [resolvable:$true] %s29_s16  ;;  %s623_s18 = int_to_ptr.vmem [resolvable:$true] %s17_s18 }
   0x4   :  { %s498_s21 = scalar_lea.hbm %s707_s1, 2048 }
   0x5   :  { %p499_p0 = scmp.ne.s32.totalorder %s707_s1, %s498_s21  ;;  %p502_p1 = scmp.lt.u32.totalorder %s498_s21, %s707_s1 }
   0x7   :  { %p504_p2 = pnand %p502_p1, %p499_p0 }
   0x9   :  { %507 = shalt.err (!%p504_p2)
}
   0xa   :  { %s508_s26 = scalar_lea.vmem %s30_s16, 2048  ;;  %p513_p4 = scmp.lt.s32.totalorder %s30_s16, %s30_s16 }
   0xb   :  { %p509_p3 = scmp.ne.s32.totalorder %s30_s16, %s508_s26  ;;  %p514_p5 = scmp.lt.s32.totalorder %s508_s26, %s508_s26 }
   0xd   :  { %p515_p6 = por %p514_p5, %p513_p4 }
   0xf   :  { %p516_p7 = pnand %p515_p6, %p509_p3 }
  0x11   :  { %519 = shalt.err (!%p516_p7)
}
  0x12   :  { %s594_s27 = smov 128   ;;  %s595_s28 = smov 8  }
  0x13   :  { %35 = dma.hbm_to_vmem [thread:$0]  %s707_s1, 2048, %s30_s16, [#allocation6], %s594_s27, %s594_s27, %s595_s28  }
  0x14   :  { %s520_s7 = scalar_lea.hbm %s706_s0, 256 }
  0x15   :  { %p521_p8 = scmp.ne.s32.totalorder %s706_s0, %s520_s7  ;;  %p524_p9 = scmp.lt.u32.totalorder %s520_s7, %s706_s0 }
  0x17   :  { %p526_p10 = pnand %p524_p9, %p521_p8 }
  0x19   :  { %529 = shalt.err (!%p526_p10)
}
  0x1a   :  { %s530_s12 = scalar_lea.vmem %s623_s18, 256  ;;  %p535_p12 = scmp.lt.s32.totalorder %s623_s18, %s623_s18 }
  0x1b   :  { %p531_p11 = scmp.ne.s32.totalorder %s623_s18, %s530_s12  ;;  %p536_p13 = scmp.lt.s32.totalorder %s530_s12, %s530_s12 }
  0x1d   :  { %p537_p0 = por %p536_p13, %p535_p12 }
  0x1f   :  { %p538_p1 = pnand %p537_p0, %p531_p11 }
  0x21   :  { %541 = shalt.err (!%p538_p1)
}
  0x22   :  { %23 = dma.hbm_to_vmem [thread:$0]  %s706_s0, 256, %s623_s18, [#allocation3], %s594_s27, %s594_s27, %s595_s28  }
  0x23   :  { %s596_s14 = smov [#allocation7]   ;;  %s542_s19 = scalar_lea.hbm %s708_s2, 2048 }
  0x24   :  { %s41_s15 = sshll.u32 %s596_s14, 4  ;;  %p543_p2 = scmp.ne.s32.totalorder %s708_s2, %s542_s19  ;;  %s42_s15 = int_to_ptr.vmem [resolvable:$true] %s41_s15 }
  0x25   :  { %p546_p3 = scmp.lt.u32.totalorder %s542_s19, %s708_s2 }
  0x27   :  { %p548_p4 = pnand %p546_p3, %p543_p2 }
  0x29   :  { %551 = shalt.err (!%p548_p4)
}
  0x2a   :  { %s552_s24 = scalar_lea.vmem %s42_s15, 2048  ;;  %p557_p6 = scmp.lt.s32.totalorder %s42_s15, %s42_s15 }
  0x2b   :  { %p553_p5 = scmp.ne.s32.totalorder %s42_s15, %s552_s24  ;;  %p558_p7 = scmp.lt.s32.totalorder %s552_s24, %s552_s24 }
  0x2d   :  { %p559_p8 = por %p558_p7, %p557_p6 }
  0x2f   :  { %p560_p9 = pnand %p559_p8, %p553_p5 }
  0x31   :  { %563 = shalt.err (!%p560_p9)
}
  0x32   :  { %47 = dma.hbm_to_vmem [thread:$0]  %s708_s2, 2048, %s42_s15, [#allocation6], %s594_s27, %s594_s27, %s595_s28  }
  0x33   :  { %586 = dma.done.wait [#allocation3], 256  }
  0x34   :  { %587 = vsyncadd [#allocation3], 4294967040 }
  0x35   :  { %588 = dma.done.wait [#allocation6], 4096  }
  0x36   :  { %589 = vsyncadd [#allocation6], 4294963200  ;;  %v65_v0 = vld [vmem:[#allocation5] sm:$0xff]  ;;  %v66_v1 = vld [vmem:[#allocation5 + $0x8] sm:$0xff]  ;;  %s597_s8 = smov [#allocation8]  }
  0x37   :  { %v67_v2 = vld [vmem:[#allocation5 + $0x10] sm:$0xff]  ;;  %v424_v3 = vpack.c.bf16 %v66_v1, %v65_v0  ;;  %v68_v4 = vld [vmem:[#allocation5 + $0x18] sm:$0xff]  ;;  %v69_v6 = vld [vmem:[#allocation5 + $0x20] sm:$0xff]  ;;  %s301_s9 = sshll.u32 %s597_s8, 4  ;;  %s302_s9 = int_to_ptr.vmem [resolvable:$true] %s301_s9 }
  0x38   :  { %v428_v5 = vpack.c.bf16 %v68_v4, %v67_v2  ;;  %v70_v7 = vld [vmem:[#allocation5 + $0x28] sm:$0xff]  ;;  %v71_v9 = vld [vmem:[#allocation5 + $0x30] sm:$0xff]  ;;  %v72_v10 = vld [vmem:[#allocation5 + $0x38] sm:$0xff]  ;;  %s564_s10 = scalar_lea.vmem %s302_s9, 256  ;;  %p569_p11 = scmp.lt.s32.totalorder %s302_s9, %s302_s9 }
  0x39   :  { %425 = vmatprep.subr.bf16.mxu0 %v424_v3  ;;  %v432_v8 = vpack.c.bf16 %v70_v7, %v69_v6  ;;  %v675_v11 = vld [vmem:[#allocation2] sm:$0xff]  ;;  %v162_v12 = vld [vmem:[#allocation7] sm:$0xff]  ;;  %v163_v13 = vld [vmem:[#allocation7 + $0x8] sm:$0xff]  ;;  %v436_v20 = vpack.c.bf16 %v72_v10, %v71_v9  ;;  %p565_p10 = scmp.ne.s32.totalorder %s302_s9, %s564_s10  ;;  %p570_p12 = scmp.lt.s32.totalorder %s564_s10, %s564_s10 }
  0x3a   :  { %427 = vmatpush3.bf16.msra.mxu0 %v424_v3  ;;  %386 = vmatprep.mubr.f32.mxu0 %v675_v11  ;;  %v164_v14 = vld [vmem:[#allocation7 + $0x10] sm:$0xff]  ;;  %v456_v15 = vpack.c.bf16 %v163_v13, %v162_v12  ;;  %v165_v16 = vld [vmem:[#allocation7 + $0x18] sm:$0xff]  ;;  %v166_v18 = vld [vmem:[#allocation7 + $0x20] sm:$0xff] }
  0x3b   :  { %429 = vmatprep.subr.bf16.mxu0 %v428_v5  ;;  %v460_v17 = vpack.c.bf16 %v165_v16, %v164_v14  ;;  %v167_v19 = vld [vmem:[#allocation7 + $0x28] sm:$0xff]  ;;  %v73_v21 = vld [vmem:[#allocation5 + $0x40] sm:$0xff]  ;;  %v168_v24 = vld [vmem:[#allocation7 + $0x30] sm:$0xff]  ;;  %p571_p13 = por %p570_p12, %p569_p11 }
  0x3c   :  { %457 = vmatprep.subr.bf16.mxu1 %v456_v15  ;;  %v74_v22 = vld [vmem:[#allocation5 + $0x48] sm:$0xff]  ;;  %v464_v23 = vpack.c.bf16 %v167_v19, %v166_v18  ;;  %v169_v25 = vld [vmem:[#allocation7 + $0x38] sm:$0xff]  ;;  %v75_v27 = vld [vmem:[#allocation5 + $0x50] sm:$0xff] }
  0x3d   :  { %459 = vmatpush3.bf16.msra.mxu1 %v456_v15  ;;  %v440_v26 = vpack.c.bf16 %v74_v22, %v73_v21  ;;  %v76_v28 = vld [vmem:[#allocation5 + $0x58] sm:$0xff]  ;;  %v468_v29 = vpack.c.bf16 %v169_v25, %v168_v24  ;;  %v170_v30 = vld [vmem:[#allocation7 + $0x40] sm:$0xff]  ;;  %v171_v31 = vld [vmem:[#allocation7 + $0x48] sm:$0xff]  ;;  %p572_p0 = pnand %p571_p13, %p565_p10 }
  0x3e   :  { %431 = vmatpush3.bf16.msra.mxu0 %v428_v5  ;;  %461 = vmatprep.subr.bf16.mxu1 %v460_v17  ;;  %v444_v32 = vpack.c.bf16 %v76_v28, %v75_v27  ;;  %v77_v33 = vld [vmem:[#allocation5 + $0x60] sm:$0xff]  ;;  %v78_v34 = vld [vmem:[#allocation5 + $0x68] sm:$0xff]  ;;  %v472_v35 = vpack.c.bf16 %v171_v31, %v170_v30  ;;  %v172_v36 = vld [vmem:[#allocation7 + $0x50] sm:$0xff] }
  0x3f   :  { %433 = vmatprep.subr.bf16.mxu0 %v432_v8  ;;  %v173_v37 = vld [vmem:[#allocation7 + $0x58] sm:$0xff]  ;;  %v448_v38 = vpack.c.bf16 %v78_v34, %v77_v33  ;;  %v79_v39 = vld [vmem:[#allocation5 + $0x70] sm:$0xff]  ;;  %v174_v42 = vld [vmem:[#allocation7 + $0x60] sm:$0xff] }
  0x40   :  { %v80_v40 = vld [vmem:[#allocation5 + $0x78] sm:$0xff]  ;;  %v476_v41 = vpack.c.bf16 %v173_v37, %v172_v36  ;;  %v175_v43 = vld [vmem:[#allocation7 + $0x68] sm:$0xff]  ;;  %v176_v47 = vld [vmem:[#allocation7 + $0x70] sm:$0xff] }
  0x41   :  { %463 = vmatpush3.bf16.msra.mxu1 %v460_v17  ;;  %v452_v44 = vpack.c.bf16 %v80_v40, %v79_v39  ;;  %v480_v45 = vpack.c.bf16 %v175_v43, %v174_v42  ;;  %v60_v46 = vld [vmem:[#allocation2 + $0x8] sm:$0xff]  ;;  %v314_v50 = vld [vmem:[%s709_s3] ss:$0 sm:$0xff]  ;;  %v315_v57 = vld [vmem:[%s709_s3 + $0x1] ss:$0 sm:$0xff] }
  0x42   :  { %435 = vmatpush3.bf16.msra.mxu0 %v432_v8  ;;  %465 = vmatprep.subr.bf16.mxu1 %v464_v23  ;;  %v177_v48 = vld [vmem:[#allocation7 + $0x78] sm:$0xff]  ;;  %v316_v14 = vld [vmem:[%s709_s3 + $0x2] ss:$0 sm:$0xff]  ;;  %v317_v16 = vld [vmem:[%s709_s3 + $0x3] ss:$0 sm:$0xff] }
  0x43   :  { %437 = vmatprep.subr.bf16.mxu0 %v436_v20  ;;  %v484_v49 = vpack.c.bf16 %v177_v48, %v176_v47 }
  0x45   :  { %467 = vmatpush3.bf16.msra.mxu1 %v464_v23 }
  0x46   :  { %439 = vmatpush3.bf16.msra.mxu0 %v436_v20  ;;  %469 = vmatprep.subr.bf16.mxu1 %v468_v29 }
  0x47   :  { %441 = vmatprep.subr.bf16.mxu0 %v440_v26 }
  0x49   :  { %471 = vmatpush3.bf16.msra.mxu1 %v468_v29 }
  0x4a   :  { %443 = vmatpush3.bf16.msra.mxu0 %v440_v26  ;;  %473 = vmatprep.subr.bf16.mxu1 %v472_v35 }
  0x4b   :  { %445 = vmatprep.subr.bf16.mxu0 %v444_v32 }
  0x4d   :  { %475 = vmatpush3.bf16.msra.mxu1 %v472_v35 }
  0x4e   :  { %447 = vmatpush3.bf16.msra.mxu0 %v444_v32  ;;  %477 = vmatprep.subr.bf16.mxu1 %v476_v41 }
  0x4f   :  { %449 = vmatprep.subr.bf16.mxu0 %v448_v38 }
  0x51   :  { %479 = vmatpush3.bf16.msra.mxu1 %v476_v41 }
  0x52   :  { %451 = vmatpush3.bf16.msra.mxu0 %v448_v38  ;;  %481 = vmatprep.subr.bf16.mxu1 %v480_v45 }
  0x53   :  { %453 = vmatprep.subr.bf16.mxu0 %v452_v44 }
  0x55   :  { %483 = vmatpush3.bf16.msra.mxu1 %v480_v45 }
  0x56   :  { %455 = vmatpush3.bf16.msra.mxu0 %v452_v44  ;;  %485 = vmatprep.subr.bf16.mxu1 %v484_v49 }
  0x59   :  { %387 = vmatmul.mubr.f32.vlgmr.msra.gmra.mrb[0].mxu0 %v60_v46  ;;  %487 = vmatpush3.bf16.msra.mxu1 %v484_v49 }
 0x12c   :  { %v388_v51 = vpop.f32.mrb[0].mxu0 }
 0x12d   :  { %v157_v52 = vadd.f32 %v388_v51, %v314_v50  ;;  %v151_v53 = vpop.f32.mrb[1].mxu0 }
 0x12e   :  { %v152_v54 = vadd.f32 %v314_v50, %v151_v53 }
 0x12f   :  { %v161_v56 = vmax.f32 %v157_v52, 0.0 }
 0x130   :  { %v160_v55 = vmax.f32 %v152_v54, 0.0 }
 0x132   :  { %421 = vmatprep.mubr.f32.mxu1 %v160_v55 }
 0x133   :  { %422 = vmatmul.mubr.f32.vlgmr.msra.gmra.mrb[0].mxu1 %v161_v56 }
 0x206   :  { %v423_v58 = vpop.f32.mrb[0].mxu1 }
 0x207   :  { %v248_v59 = vpop.f32.mrb[1].mxu1  ;;  %v254_v61 = vadd.f32 %v423_v58, %v315_v57 }
 0x208   :  { %v249_v60 = vadd.f32 %v315_v57, %v248_v59 }
 0x20a   :  { %257 = vadd.xlane.f32.xlu0 %v249_v60 }
 0x20e   :  { %259 = vadd.xlane.f32.xlu0 %v254_v61 }
 0x297   :  { %v258_v62 = vpop.xlane.xlu0 %257 }
 0x298   :  { %v262_v63 = vmul.f32 0.0078125, %v258_v62 }
 0x29a   :  { %v264_v0 = vsub.f32 %v249_v60, %v262_v63 }
 0x29b   :  { %v260_v1 = vpop.xlane.xlu0 %259 }
 0x29c   :  { %v263_v2 = vmul.f32 0.0078125, %v260_v1  ;;  %v266_v3 = vmul.f32 %v264_v0, %v264_v0 }
 0x29e   :  { %v265_v4 = vsub.f32 %v254_v61, %v263_v2  ;;  %268 = vadd.xlane.f32.xlu1 %v266_v3 }
 0x2a0   :  { %v267_v5 = vmul.f32 %v265_v4, %v265_v4 }
 0x2a2   :  { %270 = vadd.xlane.f32.xlu1 %v267_v5 }
 0x32b   :  { %v269_v6 = vpop.xlane.xlu1 %268 }
 0x32c   :  { %v272_v7 = vmul.f32 0.0078125, %v269_v6 }
 0x32e   :  { %v274_v8 = vadd.f32 1e-05, %v272_v7 }
 0x32f   :  { %v271_v9 = vpop.xlane.xlu1 %270 }
 0x330   :  { %494 = vrsqrt.f32 %v274_v8  ;;  %v273_v10 = vmul.f32 0.0078125, %v271_v9 }
 0x332   :  { %v275_v12 = vadd.f32 1e-05, %v273_v10 }
 0x334   :  { %496 = vrsqrt.f32 %v275_v12 }
 0x33a   :  { %v495_v13 = vpop.eup %494 }
 0x33b   :  { %v278_v15 = vmul.f32 %v495_v13, %v264_v0 }
 0x33d   :  { %v284_v17 = vmul.f32 %v316_v14, %v278_v15 }
 0x33e   :  { %v497_v18 = vpop.eup %496 }
 0x33f   :  { %v279_v19 = vmul.f32 %v497_v18, %v265_v4  ;;  %v290_v20 = vadd.f32 %v317_v16, %v284_v17 }
 0x341   :  { %v285_v21 = vmul.f32 %v316_v14, %v279_v19  ;;  %v292_v22 = vadd.f32 %v290_v20, %v675_v11 }
 0x343   :  { %v291_v23 = vadd.f32 %v317_v16, %v285_v21  ;;  %294 = vst [vmem:[#allocation8] sm:$0xff] %v292_v22 }
 0x345   :  { %v293_v24 = vadd.f32 %v291_v23, %v60_v46 }
 0x347   :  { %295 = vst [vmem:[#allocation8 + $0x8] sm:$0xff] %v293_v24 }
 0x348   :  { %575 = shalt.err (!%p572_p0)
}
 0x349   :  { %s576_s12 = scalar_lea.hbm %s710_s4, 256 }
 0x34a   :  { %p577_p1 = scmp.ne.s32.totalorder %s710_s4, %s576_s12  ;;  %p580_p2 = scmp.lt.u32.totalorder %s576_s12, %s710_s4 }
 0x34c   :  { %p582_p3 = pnand %p580_p2, %p577_p1 }
 0x34e   :  { %585 = shalt.err (!%p582_p3)
}
 0x34f   :  { %307 = dma.vmem_to_hbm [thread:$0]  %s302_s9, 256, %s710_s4, [#allocation4], %s594_s27, %s594_s27, %s595_s28  }
 0x350   :  { %590 = dma.done.wait [#allocation4], 256  }
 0x351   :  { %591 = vsyncadd [#allocation4], 4294967040 }
 0x352   :  { %311 = vsyncpa [#allocation3], 1 }
 0x353   :  { %312 = vsyncpa [#allocation6], 1 }
 0x354   :  { %313 = vsyncpa [#allocation4], 1 }

</bundles_post_ra>
